<compile_context>
chip_gen: v5e
topology: v5e:2x2
jax: 0.10.0
libtpu: 0.0.40
codegen_flags: <defaults>
</compile_context>

<pallas_src>
import math

import jax
import jax.numpy as jnp
from jax.experimental import pallas as pl
from jax.experimental.pallas import tpu as pltpu


# --------------------------------------------------------------------------
# Kernel
# --------------------------------------------------------------------------
def _gc_block_kernel(x_ref, w1_ref, att1_ref, sc1_ref, sh1_ref,
                     w2_ref, att2_ref, sc2_ref, sh2_ref, o_ref):
    # x_ref    : (B*N, F)    f32   batch folded into rows (MXU M dim)
    # w*_ref   : (F, F)      f32
    # att*_ref : (B*N, B*N)  f32   block-diagonal replication of (N, N) att
    # sc*/sh*  : (B*N, F)    f32   folded GCN bias + eval-mode BatchNorm affine
    # o_ref    : (B*N, F)    f32
    x = x_ref[...]

    def gcn_bn_tanh(h, w, att_blk, scale, shift):
        # support = h @ W : one MXU push (batch folded into M).
        s = jnp.dot(h, w, preferred_element_type=jnp.float32)          # (B*N, F)
        # output = att_blk @ support : one MXU push for the whole batch.
        y = jnp.dot(att_blk, s, preferred_element_type=jnp.float32)    # (B*N, F)
        # GCN bias + eval BatchNorm folded into one affine; tanh on VPU/EUP.
        return jnp.tanh(y * scale + shift)

    y = gcn_bn_tanh(x, w1_ref[...], att1_ref[...], sc1_ref[...], sh1_ref[...])
    # dropout: identity in eval mode
    y = gcn_bn_tanh(y, w2_ref[...], att2_ref[...], sc2_ref[...], sh2_ref[...])
    # dropout: identity in eval mode
    o_ref[...] = y + x                                                  # residual


# --------------------------------------------------------------------------
# Hoisted (once per weight update) parameter preparation
# --------------------------------------------------------------------------
def _fold_bias_bn(bias, gamma, beta, mean, var, *, node_n, feat, batch, eps):
    """Fold GCN bias + eval BatchNorm1d into a (B*N, F) scale/shift pair."""
    inv_std = gamma / jnp.sqrt(var + eps)                      # (N*F,)
    scale = inv_std.reshape(node_n, feat)                      # (N, F)
    shift = (beta - mean * inv_std).reshape(node_n, feat)      # (N, F)
    shift = shift + bias[None, :] * scale                      # fold GCN bias
    scale = jnp.tile(scale, (batch, 1)).astype(jnp.float32)    # (B*N, F)
    shift = jnp.tile(shift, (batch, 1)).astype(jnp.float32)    # (B*N, F)
    return scale, shift


def prepare_gc_block_params(w1, att1, b1, bn1, w2, att2, b2, bn2,
                            *, batch, eps=1e-5):
    """Build kernel-ready params. Run once per weight update, not per step."""
    node_n = att1.shape[0]
    feat = w1.shape[0]
    eye_b = jnp.eye(batch, dtype=jnp.float32)
    att1_blk = jnp.kron(eye_b, att1.astype(jnp.float32))       # (B*N, B*N)
    att2_blk = jnp.kron(eye_b, att2.astype(jnp.float32))
    sc1, sh1 = _fold_bias_bn(b1, *bn1, node_n=node_n, feat=feat,
                             batch=batch, eps=eps)
    sc2, sh2 = _fold_bias_bn(b2, *bn2, node_n=node_n, feat=feat,
                             batch=batch, eps=eps)
    return (w1.astype(jnp.float32), att1_blk, sc1, sh1,
            w2.astype(jnp.float32), att2_blk, sc2, sh2)


# --------------------------------------------------------------------------
# Per-step forward (jit-ed; only the fused pallas_call + free reshapes)
# --------------------------------------------------------------------------
@jax.jit
def gc_block_forward(x, params):
    """x: [B, N, F] f32; params from prepare_gc_block_params."""
    B, N, F = x.shape
    BN = B * N
    w1, att1_blk, sc1, sh1, w2, att2_blk, sc2, sh2 = params

    # Advisory cost (2 layers: x@W and att_blk@s, plus tanh transcendentals).
    flops = 2 * (2 * BN * F * F + 2 * BN * BN * F)
    transcendentals = 2 * BN * F
    bytes_accessed = 4 * (6 * BN * F + 2 * F * F + 2 * BN * BN)

    vmem = pl.BlockSpec(memory_space=pltpu.MemorySpace.VMEM)

    out2 = pl.pallas_call(
        _gc_block_kernel,
        out_shape=jax.ShapeDtypeStruct((BN, F), jnp.float32),
        in_specs=[vmem] * 9,
        out_specs=vmem,
        cost_estimate=pl.CostEstimate(flops=flops,
                                      transcendentals=transcendentals,
                                      bytes_accessed=bytes_accessed),
    )(x.reshape(BN, F).astype(jnp.float32),
      w1, att1_blk, sc1, sh1, w2, att2_blk, sc2, sh2)

    return out2.reshape(B, N, F).astype(x.dtype)


# --------------------------------------------------------------------------
# Pure-JAX reference (eval mode), full f32 precision
# --------------------------------------------------------------------------
def _reference(x, w1, att1, b1, bn1, w2, att2, b2, bn2, eps=1e-5):
    prec = jax.lax.Precision.HIGHEST

    def gcn(h, w, att, bias):
        s = jnp.matmul(h, w, precision=prec)
        y = jnp.matmul(att, s, precision=prec)
        return y + bias

    def bn(y, gamma, beta, mean, var):
        b_, n_, f_ = y.shape
        yf = y.reshape(b_, n_ * f_)
        yf = (yf - mean) / jnp.sqrt(var + eps) * gamma + beta
        return yf.reshape(b_, n_, f_)

    y = jnp.tanh(bn(gcn(x, w1, att1, b1), *bn1))
    y = jnp.tanh(bn(gcn(y, w2, att2, b2), *bn2))
    return y + x


if __name__ == "__main__":
    # Module hyperparameters (small, consistent with GC_Block defaults).
    in_features, node_n, batch = 32, 48, 2

    key = jax.random.PRNGKey(0)
    keys = jax.random.split(key, 15)
    stdv = 1.0 / math.sqrt(in_features)

    def uni(k, shape):
        return jax.random.uniform(k, shape, jnp.float32, -stdv, stdv)

    # GraphConvolution parameters (reset_parameters: U(-stdv, stdv)).
    w1 = uni(keys[0], (in_features, in_features))
    att1 = uni(keys[1], (node_n, node_n))
    b1 = uni(keys[2], (in_features,))
    w2 = uni(keys[3], (in_features, in_features))
    att2 = uni(keys[4], (node_n, node_n))
    b2 = uni(keys[5], (in_features,))

    # BatchNorm1d(node_n * in_features) eval-mode parameters / running stats.
    nf = node_n * in_features
    bn1 = (1.0 + 0.1 * jax.random.normal(keys[6], (nf,), jnp.float32),   # gamma
           0.1 * jax.random.normal(keys[7], (nf,), jnp.float32),         # beta
           0.1 * jax.random.normal(keys[8], (nf,), jnp.float32),         # mean
           jax.random.uniform(keys[9], (nf,), jnp.float32, 0.5, 1.5))    # var
    bn2 = (1.0 + 0.1 * jax.random.normal(keys[10], (nf,), jnp.float32),
           0.1 * jax.random.normal(keys[11], (nf,), jnp.float32),
           0.1 * jax.random.normal(keys[12], (nf,), jnp.float32),
           jax.random.uniform(keys[13], (nf,), jnp.float32, 0.5, 1.5))

    x = jax.random.normal(keys[14], (batch, node_n, in_features), jnp.float32)

    # Hoisted once (per weight update): bias+BN folding, block-diag att.
    params = prepare_gc_block_params(w1, att1, b1, bn1, w2, att2, b2, bn2,
                                     batch=batch)
    params = jax.block_until_ready(params)

    out = gc_block_forward(x, params)
    out = jax.block_until_ready(out)
    assert out.shape == (batch, node_n, in_features)

    # Check against the full-precision f32 reference (kernel is now all-f32).
    ref = _reference(x, w1, att1, b1, bn1, w2, att2, b2, bn2)
    err = float(jnp.max(jnp.abs(out - ref)))
    assert jnp.allclose(out, ref, atol=2e-2, rtol=2e-2), err

    print("KERNEL_OK")
</pallas_src>

<mosaic_0001>
module attributes {stable_mosaic.version = 11 : i64} {
  func.func @_gc_block_kernel(%arg0: memref<96x32xf32, #tpu.memory_space<vmem>>, %arg1: memref<32x32xf32, #tpu.memory_space<vmem>>, %arg2: memref<96x96xf32, #tpu.memory_space<vmem>>, %arg3: memref<96x32xf32, #tpu.memory_space<vmem>>, %arg4: memref<96x32xf32, #tpu.memory_space<vmem>>, %arg5: memref<32x32xf32, #tpu.memory_space<vmem>>, %arg6: memref<96x96xf32, #tpu.memory_space<vmem>>, %arg7: memref<96x32xf32, #tpu.memory_space<vmem>>, %arg8: memref<96x32xf32, #tpu.memory_space<vmem>>, %arg9: memref<96x32xf32, #tpu.memory_space<vmem>>) attributes {dimension_semantics = [], scalar_prefetch = 0 : i64, scratch_operands = 0 : i64, tpu.core_type = #tpu.core_type<tc>} {
    %c0 = arith.constant 0 : index
    %c0_0 = arith.constant 0 : index
    %0 = vector.load %arg0[%c0, %c0_0] : memref<96x32xf32, #tpu.memory_space<vmem>>, vector<96x32xf32>
    %c0_1 = arith.constant 0 : index
    %c0_2 = arith.constant 0 : index
    %1 = vector.load %arg1[%c0_1, %c0_2] : memref<32x32xf32, #tpu.memory_space<vmem>>, vector<32x32xf32>
    %c0_3 = arith.constant 0 : index
    %c0_4 = arith.constant 0 : index
    %2 = vector.load %arg2[%c0_3, %c0_4] : memref<96x96xf32, #tpu.memory_space<vmem>>, vector<96x96xf32>
    %c0_5 = arith.constant 0 : index
    %c0_6 = arith.constant 0 : index
    %3 = vector.load %arg3[%c0_5, %c0_6] : memref<96x32xf32, #tpu.memory_space<vmem>>, vector<96x32xf32>
    %c0_7 = arith.constant 0 : index
    %c0_8 = arith.constant 0 : index
    %4 = vector.load %arg4[%c0_7, %c0_8] : memref<96x32xf32, #tpu.memory_space<vmem>>, vector<96x32xf32>
    %cst = arith.constant dense<0.000000e+00> : vector<96x32xf32>
    %5 = tpu.matmul %0, %1, %cst {dimension_numbers = #tpu.dot_dimension_numbers<[1], [0], [0], [1], [0, 0, 1, 1], [], []>} : vector<96x32xf32>, vector<32x32xf32>, vector<96x32xf32> -> vector<96x32xf32>
    %cst_9 = arith.constant dense<0.000000e+00> : vector<96x32xf32>
    %6 = tpu.matmul %2, %5, %cst_9 {dimension_numbers = #tpu.dot_dimension_numbers<[1], [0], [0], [1], [0, 0, 1, 1], [], []>} : vector<96x96xf32>, vector<96x32xf32>, vector<96x32xf32> -> vector<96x32xf32>
    %7 = arith.mulf %6, %3 : vector<96x32xf32>
    %8 = arith.addf %7, %4 : vector<96x32xf32>
    %9 = math.tanh %8 : vector<96x32xf32>
    %c0_10 = arith.constant 0 : index
    %c0_11 = arith.constant 0 : index
    %10 = vector.load %arg5[%c0_10, %c0_11] : memref<32x32xf32, #tpu.memory_space<vmem>>, vector<32x32xf32>
    %c0_12 = arith.constant 0 : index
    %c0_13 = arith.constant 0 : index
    %11 = vector.load %arg6[%c0_12, %c0_13] : memref<96x96xf32, #tpu.memory_space<vmem>>, vector<96x96xf32>
    %c0_14 = arith.constant 0 : index
    %c0_15 = arith.constant 0 : index
    %12 = vector.load %arg7[%c0_14, %c0_15] : memref<96x32xf32, #tpu.memory_space<vmem>>, vector<96x32xf32>
    %c0_16 = arith.constant 0 : index
    %c0_17 = arith.constant 0 : index
    %13 = vector.load %arg8[%c0_16, %c0_17] : memref<96x32xf32, #tpu.memory_space<vmem>>, vector<96x32xf32>
    %cst_18 = arith.constant dense<0.000000e+00> : vector<96x32xf32>
    %14 = tpu.matmul %9, %10, %cst_18 {dimension_numbers = #tpu.dot_dimension_numbers<[1], [0], [0], [1], [0, 0, 1, 1], [], []>} : vector<96x32xf32>, vector<32x32xf32>, vector<96x32xf32> -> vector<96x32xf32>
    %cst_19 = arith.constant dense<0.000000e+00> : vector<96x32xf32>
    %15 = tpu.matmul %11, %14, %cst_19 {dimension_numbers = #tpu.dot_dimension_numbers<[1], [0], [0], [1], [0, 0, 1, 1], [], []>} : vector<96x96xf32>, vector<96x32xf32>, vector<96x32xf32> -> vector<96x32xf32>
    %16 = arith.mulf %15, %12 : vector<96x32xf32>
    %17 = arith.addf %16, %13 : vector<96x32xf32>
    %18 = math.tanh %17 : vector<96x32xf32>
    %19 = arith.addf %18, %0 : vector<96x32xf32>
    %c0_20 = arith.constant 0 : index
    %c0_21 = arith.constant 0 : index
    %20 = vector.load %arg9[%c0_20, %c0_21] : memref<96x32xf32, #tpu.memory_space<vmem>>, vector<96x32xf32>
    tpu.vector_store %arg9[%c0_20, %c0_21], %19 {strides = array<i32>} : memref<96x32xf32, #tpu.memory_space<vmem>>, vector<96x32xf32>,
    return
  }
}

</mosaic_0001>

<bundles_post_ra>
// kernel: gc_block_forward.1
= control target key start
LH: loop header
LB: loop body
LE: loop exit
PB: predicated region body
PF: predicated region fallthrough
CT: control target
= control target key end

     0   :  { %vm84_vm0 = vcmask 261120   ;;  %vm174_vm1 = vcmask 785408   ;;  %s1172_s1 = inlined_call_operand.vmem [shape: f32[32,32], index: 1, kind: input, shape index: {}]   ;;  %s1173_s0 = inlined_call_operand.vmem [shape: f32[96,32], index: 0, kind: input, shape index: {}]   ;;  %s1174_s2 = inlined_call_operand.vmem [shape: f32[96,96], index: 2, kind: input, shape index: {}]   ;;  %s1175_s5 = inlined_call_operand.vmem [shape: f32[32,32], index: 5, kind: input, shape index: {}]   ;;  %s1176_s3 = inlined_call_operand.vmem [shape: f32[96,32], index: 3, kind: input, shape index: {}]   ;;  %s1177_s4 = inlined_call_operand.vmem [shape: f32[96,32], index: 4, kind: input, shape index: {}]   ;;  %s1178_s6 = inlined_call_operand.vmem [shape: f32[96,96], index: 6, kind: input, shape index: {}]   ;;  %s1179_s7 = inlined_call_operand.vmem [shape: f32[96,32], index: 7, kind: input, shape index: {}]   ;;  %s1180_s8 = inlined_call_operand.vmem [shape: f32[96,32], index: 8, kind: input, shape index: {}]   ;;  %s1181_s9 = inlined_call_operand.vmem [shape: f32[96,32], index: 9, kind: output, shape index: {}]  }
   0x1   :  { %v47_v0 = vld [vmem:[%s1172_s1 + $0x18] sm:$0xff]  ;;  %v46_v1 = vld [vmem:[%s1172_s1 + $0x10] sm:$0xff]  ;;  %v45_v2 = vld [vmem:[%s1172_s1 + $0x8] sm:$0xff] }
   0x2   :  { %133 = vmatpush.msra.mxu0 %v47_v0  ;;  %v44_v3 = vld [vmem:[%s1172_s1] sm:$0xff]  ;;  %v774_v5 = vld [vmem:[%s1173_s0 + $0x8] sm:$0xff]  ;;  %v781_v6 = vld [vmem:[%s1173_s0 + $0x10] sm:$0xff] }
   0x3   :  { %v767_v4 = vld [vmem:[%s1173_s0] sm:$0xff]  ;;  %v788_v7 = vld [vmem:[%s1173_s0 + $0x18] sm:$0xff]  ;;  %v802_v9 = vld [vmem:[%s1173_s0 + $0x28] sm:$0xff] }
   0x4   :  { %134 = vmatpush.msra.mxu0 %v46_v1  ;;  %v795_v8 = vld [vmem:[%s1173_s0 + $0x20] sm:$0xff]  ;;  %v809_v10 = vld [vmem:[%s1173_s0 + $0x30] sm:$0xff]  ;;  %v816_v11 = vld [vmem:[%s1173_s0 + $0x38] sm:$0xff] }
   0x5   :  { %v823_v12 = vld [vmem:[%s1173_s0 + $0x40] sm:$0xff]  ;;  %v830_v13 = vld [vmem:[%s1173_s0 + $0x48] sm:$0xff]  ;;  %v837_v14 = vld [vmem:[%s1173_s0 + $0x50] sm:$0xff] }
   0x6   :  { %135 = vmatpush.msra.mxu0 %v45_v2  ;;  %v844_v15 = vld [vmem:[%s1173_s0 + $0x58] sm:$0xff]  ;;  %v48_v28 = vld [vmem:[%s1174_s2] sm:$0xff]  ;;  %v49_v29 = vld [vmem:[%s1174_s2 + $0x8] sm:$0xff] }
   0x7   :  { %v50_v30 = vld [vmem:[%s1174_s2 + $0x10] sm:$0xff]  ;;  %v51_v31 = vld [vmem:[%s1174_s2 + $0x18] sm:$0xff]  ;;  %v52_v32 = vld [vmem:[%s1174_s2 + $0x20] sm:$0xff] }
   0x8   :  { %136 = vmatpush.msra.mxu0 %v44_v3  ;;  %v53_v33 = vld [vmem:[%s1174_s2 + $0x28] sm:$0xff]  ;;  %v54_v34 = vld [vmem:[%s1174_s2 + $0x30] sm:$0xff]  ;;  %v55_v35 = vld [vmem:[%s1174_s2 + $0x38] sm:$0xff] }
   0x9   :  { %582 = vmatmul.msk.f32.vlgmr.msra.gmra.mxu0 %vm84_vm0, %v767_v4  ;;  %v56_v36 = vld [vmem:[%s1174_s2 + $0x40] sm:$0xff]  ;;  %v57_v37 = vld [vmem:[%s1174_s2 + $0x48] sm:$0xff]  ;;  %v58_v38 = vld [vmem:[%s1174_s2 + $0x50] sm:$0xff] }
   0xa   :  { %v59_v39 = vld [vmem:[%s1174_s2 + $0x58] sm:$0xff]  ;;  %v302_v41 = vld [vmem:[%s1175_s5 + $0x10] sm:$0xff]  ;;  %v301_v42 = vld [vmem:[%s1175_s5 + $0x8] sm:$0xff] }
   0xb   :  { %v303_v40 = vld [vmem:[%s1175_s5 + $0x18] sm:$0xff]  ;;  %v300_v43 = vld [vmem:[%s1175_s5] sm:$0xff]  ;;  %v61_v47 = vld [vmem:[%s1176_s3 + $0x8] sm:$0xff] }
   0xc   :  { %388 = vmatpush.msra.mxu2 %v303_v40  ;;  %v60_v44 = vld [vmem:[%s1176_s3] sm:$0xff]  ;;  %v73_v52 = vld [vmem:[%s1177_s4 + $0x8] sm:$0xff]  ;;  %v62_v54 = vld [vmem:[%s1176_s3 + $0x10] sm:$0xff] }
   0xd   :  { %v72_v45 = vld [vmem:[%s1177_s4] sm:$0xff]  ;;  %v74_v58 = vld [vmem:[%s1177_s4 + $0x10] sm:$0xff]  ;;  %v63_v60 = vld [vmem:[%s1176_s3 + $0x18] sm:$0xff] }
   0xe   :  { %389 = vmatpush.msra.mxu2 %v302_v41  ;;  %v75_v0 = vld [vmem:[%s1177_s4 + $0x18] sm:$0xff]  ;;  %v64_v2 = vld [vmem:[%s1176_s3 + $0x20] sm:$0xff] }
  0x10   :  { %390 = vmatpush.msra.mxu2 %v301_v42  ;;  %v80_v42 = vld [vmem:[%s1177_s4 + $0x40] sm:$0xff] }
  0x11   :  { %583 = vmatmul.msk.f32.gmra.mxu0 %vm84_vm0, %v774_v5 }
  0x12   :  { %391 = vmatpush.msra.mxu2 %v300_v43 }
  0x19   :  { %584 = vmatmul.msk.f32.gmra.mxu0 %vm84_vm0, %v781_v6 }
  0x21   :  { %585 = vmatmul.msk.f32.gmra.mxu0 %vm84_vm0, %v788_v7 }
  0x29   :  { %586 = vmatmul.msk.f32.gmra.mxu0 %vm84_vm0, %v795_v8 }
  0x31   :  { %587 = vmatmul.msk.f32.gmra.mxu0 %vm84_vm0, %v802_v9 }
  0x39   :  { %588 = vmatmul.msk.f32.gmra.mxu0 %vm84_vm0, %v809_v10 }
  0x41   :  { %589 = vmatmul.msk.f32.gmra.mxu0 %vm84_vm0, %v816_v11 }
  0x49   :  { %590 = vmatmul.msk.f32.gmra.mxu0 %vm84_vm0, %v823_v12 }
  0x51   :  { %591 = vmatmul.msk.f32.gmra.mxu0 %vm84_vm0, %v830_v13 }
  0x59   :  { %592 = vmatmul.msk.f32.gmra.mxu0 %vm84_vm0, %v837_v14 }
  0x61   :  { %593 = vmatmul.msk.f32.gmra.mxu0 %vm84_vm0, %v844_v15 }
  0x86   :  { %v138_v16 = vpop.f32.mrf.mxu0 }
  0x8e   :  { %v141_v17 = vpop.f32.mrf.mxu0 }
  0x96   :  { %v144_v18 = vpop.f32.mrf.mxu0 }
  0x9e   :  { %v147_v19 = vpop.f32.mrf.mxu0 }
  0xa6   :  { %v150_v20 = vpop.f32.mrf.mxu0 }
  0xae   :  { %v153_v21 = vpop.f32.mrf.mxu0 }
  0xb6   :  { %v156_v22 = vpop.f32.mrf.mxu0 }
  0xbe   :  { %v159_v23 = vpop.f32.mrf.mxu0 }
  0xc6   :  { %v162_v24 = vpop.f32.mrf.mxu0 }
  0xce   :  { %v165_v25 = vpop.f32.mrf.mxu0 }
  0xd6   :  { %v168_v26 = vpop.f32.mrf.mxu0 }
  0xde   :  { %v171_v27 = vpop.f32.mrf.mxu0 }
  0xdf   :  { %215 = vmatpush.msrb.mxu0 %v171_v27  ;;  %630 = vmatpush.msra.mxu1 %v171_v27 }
  0xe1   :  { %216 = vmatpush.msrb.mxu0 %v168_v26  ;;  %631 = vmatpush.msra.mxu1 %v168_v26  ;;  %v66_v26 = vld [vmem:[%s1176_s3 + $0x30] sm:$0xff] }
  0xe3   :  { %217 = vmatpush.msrb.mxu0 %v165_v25  ;;  %632 = vmatpush.msra.mxu1 %v165_v25 }
  0xe5   :  { %218 = vmatpush.msrb.mxu0 %v162_v24  ;;  %633 = vmatpush.msra.mxu1 %v162_v24  ;;  %v77_v24 = vld [vmem:[%s1177_s4 + $0x28] sm:$0xff] }
  0xe7   :  { %219 = vmatpush.msrb.mxu0 %v159_v23  ;;  %634 = vmatpush.msra.mxu1 %v159_v23 }
  0xe9   :  { %220 = vmatpush.msrb.mxu0 %v156_v22  ;;  %635 = vmatpush.msra.mxu1 %v156_v22 }
  0xeb   :  { %221 = vmatpush.msrb.mxu0 %v153_v21  ;;  %636 = vmatpush.msra.mxu1 %v153_v21 }
  0xed   :  { %222 = vmatpush.msrb.mxu0 %v150_v20  ;;  %637 = vmatpush.msra.mxu1 %v150_v20  ;;  %v65_v20 = vld [vmem:[%s1176_s3 + $0x28] sm:$0xff] }
  0xef   :  { %223 = vmatpush.msrb.mxu0 %v147_v19  ;;  %638 = vmatpush.msra.mxu1 %v147_v19 }
  0xf1   :  { %224 = vmatpush.msrb.mxu0 %v144_v18  ;;  %639 = vmatpush.msra.mxu1 %v144_v18  ;;  %v76_v18 = vld [vmem:[%s1177_s4 + $0x20] sm:$0xff] }
  0xf3   :  { %225 = vmatpush.msrb.mxu0 %v141_v17  ;;  %640 = vmatpush.msra.mxu1 %v141_v17 }
  0xf5   :  { %226 = vmatpush.msrb.mxu0 %v138_v16  ;;  %641 = vmatpush.msra.mxu1 %v138_v16 }
  0xf6   :  { %594 = vmatmul.msk.f32.vlgmr.msrb.gmra.mxu0 %vm174_vm1, %v48_v28  ;;  %595 = vmatmul.msk.f32.vlgmr.msra.gmra.mxu1 %vm174_vm1, %v49_v29 }
  0xfe   :  { %596 = vmatmul.msk.f32.gmra.mxu1 %vm174_vm1, %v50_v30  ;;  %v78_v30 = vld [vmem:[%s1177_s4 + $0x30] sm:$0xff] }
 0x106   :  { %597 = vmatmul.msk.f32.gmra.mxu1 %vm174_vm1, %v51_v31 }
 0x10e   :  { %598 = vmatmul.msk.f32.gmra.mxu1 %vm174_vm1, %v52_v32  ;;  %v67_v32 = vld [vmem:[%s1176_s3 + $0x38] sm:$0xff] }
 0x116   :  { %599 = vmatmul.msk.f32.gmra.mxu1 %vm174_vm1, %v53_v33 }
 0x11e   :  { %600 = vmatmul.msk.f32.gmra.mxu1 %vm174_vm1, %v54_v34 }
 0x126   :  { %601 = vmatmul.msk.f32.gmra.mxu1 %vm174_vm1, %v55_v35 }
 0x12e   :  { %602 = vmatmul.msk.f32.gmra.mxu1 %vm174_vm1, %v56_v36  ;;  %v79_v36 = vld [vmem:[%s1177_s4 + $0x38] sm:$0xff] }
 0x136   :  { %603 = vmatmul.msk.f32.gmra.mxu1 %vm174_vm1, %v57_v37 }
 0x13e   :  { %604 = vmatmul.msk.f32.gmra.mxu1 %vm174_vm1, %v58_v38  ;;  %v68_v38 = vld [vmem:[%s1176_s3 + $0x40] sm:$0xff] }
 0x146   :  { %605 = vmatmul.msk.f32.gmra.mxu1 %vm174_vm1, %v59_v39 }
 0x173   :  { %v228_v46 = vpop.f32.mrf.mxu0  ;;  %v231_v48 = vpop.f32.mrf.mxu1 }
 0x174   :  { %v264_v49 = vmul.f32 %v228_v46, %v60_v44  ;;  %v265_v51 = vmul.f32 %v231_v48, %v61_v47  ;;  %v69_v44 = vld [vmem:[%s1176_s3 + $0x48] sm:$0xff] }
 0x175   :  { %v81_v48 = vld [vmem:[%s1177_s4 + $0x48] sm:$0xff] }
 0x176   :  { %v276_v50 = vadd.f32 %v264_v49, %v72_v45  ;;  %v277_v53 = vadd.f32 %v265_v51, %v73_v52 }
 0x178   :  { %654 = vtanh.f32 %v276_v50  ;;  %v70_v50 = vld [vmem:[%s1176_s3 + $0x50] sm:$0xff] }
 0x179   :  { %656 = vtanh.f32 %v277_v53 }
 0x17b   :  { %v234_v55 = vpop.f32.mrf.mxu1 }
 0x17c   :  { %v266_v57 = vmul.f32 %v234_v55, %v62_v54  ;;  %v82_v54 = vld [vmem:[%s1177_s4 + $0x50] sm:$0xff] }
 0x17e   :  { %v655_v56 = vpop.eup %654  ;;  %v278_v59 = vadd.f32 %v266_v57, %v74_v58 }
 0x17f   :  { %606 = vmatmul.msk.f32.vlgmr.msra.gmra.mxu2 %vm84_vm0, %v655_v56  ;;  %v657_v62 = vpop.eup %656  ;;  %v71_v56 = vld [vmem:[%s1176_s3 + $0x58] sm:$0xff] }
 0x180   :  { %658 = vtanh.f32 %v278_v59 }
 0x183   :  { %v237_v61 = vpop.f32.mrf.mxu1 }
 0x184   :  { %v267_v63 = vmul.f32 %v237_v61, %v63_v60  ;;  %v83_v60 = vld [vmem:[%s1177_s4 + $0x58] sm:$0xff] }
 0x186   :  { %v279_v1 = vadd.f32 %v267_v63, %v75_v0  ;;  %v659_v16 = vpop.eup %658 }
 0x187   :  { %607 = vmatmul.msk.f32.gmra.mxu2 %vm84_vm0, %v657_v62 }
 0x188   :  { %660 = vtanh.f32 %v279_v1 }
 0x18b   :  { %v240_v3 = vpop.f32.mrf.mxu1 }
 0x18c   :  { %v268_v17 = vmul.f32 %v240_v3, %v64_v2 }
 0x18e   :  { %v280_v19 = vadd.f32 %v268_v17, %v76_v18  ;;  %v661_v22 = vpop.eup %660 }
 0x18f   :  { %608 = vmatmul.msk.f32.gmra.mxu2 %vm84_vm0, %v659_v16 }
 0x190   :  { %662 = vtanh.f32 %v280_v19 }
 0x193   :  { %v243_v21 = vpop.f32.mrf.mxu1 }
 0x194   :  { %v269_v23 = vmul.f32 %v243_v21, %v65_v20 }
 0x196   :  { %v281_v25 = vadd.f32 %v269_v23, %v77_v24  ;;  %v663_v28 = vpop.eup %662  ;;  %v305_v24 = vld [vmem:[%s1178_s6 + $0x8] sm:$0xff] }
 0x197   :  { %609 = vmatmul.msk.f32.gmra.mxu2 %vm84_vm0, %v661_v22 }
 0x198   :  { %664 = vtanh.f32 %v281_v25  ;;  %v306_v25 = vld [vmem:[%s1178_s6 + $0x10] sm:$0xff] }
 0x19b   :  { %v246_v27 = vpop.f32.mrf.mxu1 }
 0x19c   :  { %v270_v29 = vmul.f32 %v246_v27, %v66_v26  ;;  %v307_v26 = vld [vmem:[%s1178_s6 + $0x18] sm:$0xff]  ;;  %v308_v27 = vld [vmem:[%s1178_s6 + $0x20] sm:$0xff] }
 0x19e   :  { %v282_v31 = vadd.f32 %v270_v29, %v78_v30  ;;  %v665_v34 = vpop.eup %664  ;;  %v310_v29 = vld [vmem:[%s1178_s6 + $0x30] sm:$0xff]  ;;  %v304_v30 = vld [vmem:[%s1178_s6] sm:$0xff] }
 0x19f   :  { %610 = vmatmul.msk.f32.gmra.mxu2 %vm84_vm0, %v663_v28  ;;  %v309_v28 = vld [vmem:[%s1178_s6 + $0x28] sm:$0xff] }
 0x1a0   :  { %666 = vtanh.f32 %v282_v31  ;;  %v311_v31 = vld [vmem:[%s1178_s6 + $0x38] sm:$0xff] }
 0x1a3   :  { %v249_v33 = vpop.f32.mrf.mxu1 }
 0x1a4   :  { %v271_v35 = vmul.f32 %v249_v33, %v67_v32  ;;  %v312_v32 = vld [vmem:[%s1178_s6 + $0x40] sm:$0xff]  ;;  %v313_v33 = vld [vmem:[%s1178_s6 + $0x48] sm:$0xff] }
 0x1a6   :  { %v283_v37 = vadd.f32 %v271_v35, %v79_v36  ;;  %v667_v40 = vpop.eup %666  ;;  %v315_v35 = vld [vmem:[%s1178_s6 + $0x58] sm:$0xff]  ;;  %v317_v36 = vld [vmem:[%s1179_s7 + $0x8] sm:$0xff] }
 0x1a7   :  { %611 = vmatmul.msk.f32.gmra.mxu2 %vm84_vm0, %v665_v34  ;;  %v314_v34 = vld [vmem:[%s1178_s6 + $0x50] sm:$0xff] }
 0x1a8   :  { %668 = vtanh.f32 %v283_v37  ;;  %v329_v37 = vld [vmem:[%s1180_s8 + $0x8] sm:$0xff] }
 0x1ab   :  { %v252_v39 = vpop.f32.mrf.mxu1 }
 0x1ac   :  { %v272_v41 = vmul.f32 %v252_v39, %v68_v38 }
 0x1ae   :  { %v284_v43 = vadd.f32 %v272_v41, %v80_v42  ;;  %v669_v46 = vpop.eup %668  ;;  %v318_v41 = vld [vmem:[%s1179_s7 + $0x10] sm:$0xff] }
 0x1af   :  { %612 = vmatmul.msk.f32.gmra.mxu2 %vm84_vm0, %v667_v40  ;;  %v330_v42 = vld [vmem:[%s1180_s8 + $0x10] sm:$0xff] }
 0x1b0   :  { %670 = vtanh.f32 %v284_v43 }
 0x1b3   :  { %v255_v45 = vpop.f32.mrf.mxu1 }
 0x1b4   :  { %v273_v47 = vmul.f32 %v255_v45, %v69_v44 }
 0x1b6   :  { %v285_v49 = vadd.f32 %v273_v47, %v81_v48  ;;  %v671_v52 = vpop.eup %670  ;;  %v319_v48 = vld [vmem:[%s1179_s7 + $0x18] sm:$0xff] }
 0x1b7   :  { %613 = vmatmul.msk.f32.gmra.mxu2 %vm84_vm0, %v669_v46 }
 0x1b8   :  { %672 = vtanh.f32 %v285_v49  ;;  %v331_v49 = vld [vmem:[%s1180_s8 + $0x18] sm:$0xff] }
 0x1bb   :  { %v258_v51 = vpop.f32.mrf.mxu1 }
 0x1bc   :  { %v274_v53 = vmul.f32 %v258_v51, %v70_v50 }
 0x1be   :  { %v286_v55 = vadd.f32 %v274_v53, %v82_v54  ;;  %v673_v58 = vpop.eup %672  ;;  %v320_v54 = vld [vmem:[%s1179_s7 + $0x20] sm:$0xff] }
 0x1bf   :  { %614 = vmatmul.msk.f32.gmra.mxu2 %vm84_vm0, %v671_v52 }
 0x1c0   :  { %674 = vtanh.f32 %v286_v55  ;;  %v332_v55 = vld [vmem:[%s1180_s8 + $0x20] sm:$0xff] }
 0x1c3   :  { %v261_v57 = vpop.f32.mrf.mxu1 }
 0x1c4   :  { %v275_v59 = vmul.f32 %v261_v57, %v71_v56 }
 0x1c6   :  { %v287_v61 = vadd.f32 %v275_v59, %v83_v60  ;;  %v675_v62 = vpop.eup %674  ;;  %v321_v60 = vld [vmem:[%s1179_s7 + $0x28] sm:$0xff] }
 0x1c7   :  { %615 = vmatmul.msk.f32.gmra.mxu2 %vm84_vm0, %v673_v58 }
 0x1c8   :  { %676 = vtanh.f32 %v287_v61  ;;  %v333_v61 = vld [vmem:[%s1180_s8 + $0x28] sm:$0xff] }
 0x1ce   :  { %v677_v63 = vpop.eup %676 }
 0x1cf   :  { %616 = vmatmul.msk.f32.gmra.mxu2 %vm84_vm0, %v675_v62 }
 0x1d7   :  { %617 = vmatmul.msk.f32.gmra.mxu2 %vm84_vm0, %v677_v63 }
 0x202   :  { %v393_v0 = vpop.f32.mrf.mxu2 }
 0x20a   :  { %v396_v1 = vpop.f32.mrf.mxu2 }
 0x212   :  { %v399_v2 = vpop.f32.mrf.mxu2 }
 0x21a   :  { %v402_v3 = vpop.f32.mrf.mxu2 }
 0x222   :  { %v405_v16 = vpop.f32.mrf.mxu2 }
 0x22a   :  { %v408_v17 = vpop.f32.mrf.mxu2 }
 0x232   :  { %v411_v18 = vpop.f32.mrf.mxu2 }
 0x23a   :  { %v414_v19 = vpop.f32.mrf.mxu2 }
 0x242   :  { %v417_v20 = vpop.f32.mrf.mxu2 }
 0x24a   :  { %v420_v21 = vpop.f32.mrf.mxu2 }
 0x252   :  { %v423_v22 = vpop.f32.mrf.mxu2 }
 0x25a   :  { %v426_v23 = vpop.f32.mrf.mxu2 }
 0x25b   :  { %469 = vmatpush.msrb.mxu2 %v426_v23  ;;  %642 = vmatpush.msra.mxu3 %v426_v23  ;;  %v316_v23 = vld [vmem:[%s1179_s7] sm:$0xff] }
 0x25d   :  { %470 = vmatpush.msrb.mxu2 %v423_v22  ;;  %643 = vmatpush.msra.mxu3 %v423_v22 }
 0x25f   :  { %471 = vmatpush.msrb.mxu2 %v420_v21  ;;  %644 = vmatpush.msra.mxu3 %v420_v21  ;;  %v335_v21 = vld [vmem:[%s1180_s8 + $0x38] sm:$0xff] }
 0x261   :  { %472 = vmatpush.msrb.mxu2 %v417_v20  ;;  %645 = vmatpush.msra.mxu3 %v417_v20  ;;  %v323_v20 = vld [vmem:[%s1179_s7 + $0x38] sm:$0xff] }
 0x263   :  { %473 = vmatpush.msrb.mxu2 %v414_v19  ;;  %646 = vmatpush.msra.mxu3 %v414_v19 }
 0x265   :  { %474 = vmatpush.msrb.mxu2 %v411_v18  ;;  %647 = vmatpush.msra.mxu3 %v411_v18 }
 0x267   :  { %475 = vmatpush.msrb.mxu2 %v408_v17  ;;  %648 = vmatpush.msra.mxu3 %v408_v17 }
 0x269   :  { %476 = vmatpush.msrb.mxu2 %v405_v16  ;;  %649 = vmatpush.msra.mxu3 %v405_v16 }
 0x26b   :  { %477 = vmatpush.msrb.mxu2 %v402_v3  ;;  %650 = vmatpush.msra.mxu3 %v402_v3  ;;  %v334_v3 = vld [vmem:[%s1180_s8 + $0x30] sm:$0xff] }
 0x26d   :  { %478 = vmatpush.msrb.mxu2 %v399_v2  ;;  %651 = vmatpush.msra.mxu3 %v399_v2  ;;  %v322_v2 = vld [vmem:[%s1179_s7 + $0x30] sm:$0xff] }
 0x26f   :  { %479 = vmatpush.msrb.mxu2 %v396_v1  ;;  %652 = vmatpush.msra.mxu3 %v396_v1 }
 0x271   :  { %480 = vmatpush.msrb.mxu2 %v393_v0  ;;  %653 = vmatpush.msra.mxu3 %v393_v0 }
 0x272   :  { %619 = vmatmul.msk.f32.vlgmr.msra.gmra.mxu3 %vm174_vm1, %v305_v24  ;;  %618 = vmatmul.msk.f32.vlgmr.msrb.gmra.mxu2 %vm174_vm1, %v304_v30 }
 0x27a   :  { %620 = vmatmul.msk.f32.gmra.mxu3 %vm174_vm1, %v306_v25 }
 0x282   :  { %621 = vmatmul.msk.f32.gmra.mxu3 %vm174_vm1, %v307_v26  ;;  %v328_v26 = vld [vmem:[%s1180_s8] sm:$0xff] }
 0x28a   :  { %622 = vmatmul.msk.f32.gmra.mxu3 %vm174_vm1, %v308_v27 }
 0x292   :  { %623 = vmatmul.msk.f32.gmra.mxu3 %vm174_vm1, %v309_v28 }
 0x29a   :  { %624 = vmatmul.msk.f32.gmra.mxu3 %vm174_vm1, %v310_v29 }
 0x2a2   :  { %625 = vmatmul.msk.f32.gmra.mxu3 %vm174_vm1, %v311_v31  ;;  %v324_v31 = vld [vmem:[%s1179_s7 + $0x40] sm:$0xff] }
 0x2aa   :  { %626 = vmatmul.msk.f32.gmra.mxu3 %vm174_vm1, %v312_v32  ;;  %v336_v32 = vld [vmem:[%s1180_s8 + $0x40] sm:$0xff] }
 0x2b2   :  { %627 = vmatmul.msk.f32.gmra.mxu3 %vm174_vm1, %v313_v33 }
 0x2ba   :  { %628 = vmatmul.msk.f32.gmra.mxu3 %vm174_vm1, %v314_v34 }
 0x2c2   :  { %629 = vmatmul.msk.f32.gmra.mxu3 %vm174_vm1, %v315_v35 }
 0x2f5   :  { %v485_v38 = vpop.f32.mrf.mxu3 }
 0x2f6   :  { %v519_v39 = vmul.f32 %v485_v38, %v317_v36 }
 0x2f8   :  { %v531_v40 = vadd.f32 %v519_v39, %v329_v37  ;;  %v325_v39 = vld [vmem:[%s1179_s7 + $0x48] sm:$0xff] }
 0x2fa   :  { %678 = vtanh.f32 %v531_v40 }
 0x2fd   :  { %v488_v43 = vpop.f32.mrf.mxu3 }
 0x2fe   :  { %v520_v44 = vmul.f32 %v488_v43, %v318_v41 }
 0x300   :  { %v679_v45 = vpop.eup %678  ;;  %v532_v46 = vadd.f32 %v520_v44, %v330_v42  ;;  %v326_v44 = vld [vmem:[%s1179_s7 + $0x50] sm:$0xff] }
 0x301   :  { %v555_v47 = vadd.f32 %v679_v45, %v774_v5  ;;  %v338_v45 = vld [vmem:[%s1180_s8 + $0x50] sm:$0xff] }
 0x302   :  { %680 = vtanh.f32 %v532_v46 }
 0x303   :  { %567 = vst.msk [vmem:[%s1181_s9 + $0x8] sm:$0xff] %vm84_vm0, %v555_v47 }
 0x305   :  { %v491_v50 = vpop.f32.mrf.mxu3 }
 0x306   :  { %v521_v51 = vmul.f32 %v491_v50, %v319_v48  ;;  %v327_v50 = vld [vmem:[%s1179_s7 + $0x58] sm:$0xff] }
 0x308   :  { %v681_v52 = vpop.eup %680  ;;  %v533_v53 = vadd.f32 %v521_v51, %v331_v49  ;;  %v339_v51 = vld [vmem:[%s1180_s8 + $0x58] sm:$0xff] }
 0x309   :  { %v556_v5 = vadd.f32 %v681_v52, %v781_v6 }
 0x30a   :  { %682 = vtanh.f32 %v533_v53 }
 0x30b   :  { %568 = vst.msk [vmem:[%s1181_s9 + $0x10] sm:$0xff] %vm84_vm0, %v556_v5 }
 0x30d   :  { %v494_v56 = vpop.f32.mrf.mxu3 }
 0x30e   :  { %v522_v57 = vmul.f32 %v494_v56, %v320_v54 }
 0x310   :  { %v683_v58 = vpop.eup %682  ;;  %v534_v59 = vadd.f32 %v522_v57, %v332_v55 }
 0x311   :  { %v557_v6 = vadd.f32 %v683_v58, %v788_v7 }
 0x312   :  { %684 = vtanh.f32 %v534_v59 }
 0x313   :  { %569 = vst.msk [vmem:[%s1181_s9 + $0x18] sm:$0xff] %vm84_vm0, %v557_v6 }
 0x315   :  { %v497_v62 = vpop.f32.mrf.mxu3 }
 0x316   :  { %v523_v63 = vmul.f32 %v497_v62, %v321_v60 }
 0x318   :  { %v685_v0 = vpop.eup %684  ;;  %v535_v1 = vadd.f32 %v523_v63, %v333_v61 }
 0x319   :  { %v558_v7 = vadd.f32 %v685_v0, %v795_v8 }
 0x31a   :  { %686 = vtanh.f32 %v535_v1 }
 0x31b   :  { %570 = vst.msk [vmem:[%s1181_s9 + $0x20] sm:$0xff] %vm84_vm0, %v558_v7 }
 0x31d   :  { %v500_v16 = vpop.f32.mrf.mxu3 }
 0x31e   :  { %v524_v17 = vmul.f32 %v500_v16, %v322_v2 }
 0x320   :  { %v687_v18 = vpop.eup %686  ;;  %v536_v19 = vadd.f32 %v524_v17, %v334_v3 }
 0x321   :  { %v559_v8 = vadd.f32 %v687_v18, %v802_v9  ;;  %v482_v9 = vpop.f32.mrf.mxu2 }
 0x322   :  { %688 = vtanh.f32 %v536_v19  ;;  %v518_v25 = vmul.f32 %v482_v9, %v316_v23 }
 0x323   :  { %571 = vst.msk [vmem:[%s1181_s9 + $0x28] sm:$0xff] %vm84_vm0, %v559_v8 }
 0x324   :  { %v530_v29 = vadd.f32 %v518_v25, %v328_v26 }
 0x325   :  { %v503_v22 = vpop.f32.mrf.mxu3 }
 0x326   :  { %v525_v24 = vmul.f32 %v503_v22, %v323_v20 }
 0x328   :  { %v689_v27 = vpop.eup %688  ;;  %v537_v28 = vadd.f32 %v525_v24, %v335_v21 }
 0x329   :  { %v560_v30 = vadd.f32 %v689_v27, %v809_v10 }
 0x32a   :  { %690 = vtanh.f32 %v537_v28 }
 0x32b   :  { %572 = vst.msk [vmem:[%s1181_s9 + $0x30] sm:$0xff] %vm84_vm0, %v560_v30  ;;  %692 = vtanh.f32 %v530_v29 }
 0x32d   :  { %v506_v33 = vpop.f32.mrf.mxu3 }
 0x32e   :  { %v526_v34 = vmul.f32 %v506_v33, %v324_v31 }
 0x330   :  { %v691_v35 = vpop.eup %690  ;;  %v538_v36 = vadd.f32 %v526_v34, %v336_v32 }
 0x331   :  { %v693_v10 = vpop.eup %692  ;;  %v561_v37 = vadd.f32 %v691_v35, %v816_v11  ;;  %v337_v11 = vld [vmem:[%s1180_s8 + $0x48] sm:$0xff] }
 0x332   :  { %694 = vtanh.f32 %v538_v36  ;;  %v554_v38 = vadd.f32 %v693_v10, %v767_v4 }
 0x333   :  { %573 = vst.msk [vmem:[%s1181_s9 + $0x38] sm:$0xff] %vm84_vm0, %v561_v37 }
 0x334   :  { %566 = vst.msk [vmem:[%s1181_s9] sm:$0xff] %vm84_vm0, %v554_v38 }
 0x335   :  { %v509_v40 = vpop.f32.mrf.mxu3 }
 0x336   :  { %v527_v4 = vmul.f32 %v509_v40, %v325_v39 }
 0x338   :  { %v695_v41 = vpop.eup %694  ;;  %v539_v42 = vadd.f32 %v527_v4, %v337_v11 }
 0x339   :  { %v562_v43 = vadd.f32 %v695_v41, %v823_v12 }
 0x33a   :  { %696 = vtanh.f32 %v539_v42 }
 0x33b   :  { %574 = vst.msk [vmem:[%s1181_s9 + $0x40] sm:$0xff] %vm84_vm0, %v562_v43 }
 0x33d   :  { %v512_v46 = vpop.f32.mrf.mxu3 }
 0x33e   :  { %v528_v47 = vmul.f32 %v512_v46, %v326_v44 }
 0x340   :  { %v697_v48 = vpop.eup %696  ;;  %v540_v49 = vadd.f32 %v528_v47, %v338_v45 }
 0x341   :  { %v563_v12 = vadd.f32 %v697_v48, %v830_v13 }
 0x342   :  { %698 = vtanh.f32 %v540_v49 }
 0x343   :  { %575 = vst.msk [vmem:[%s1181_s9 + $0x48] sm:$0xff] %vm84_vm0, %v563_v12 }
 0x345   :  { %v515_v52 = vpop.f32.mrf.mxu3 }
 0x346   :  { %v529_v53 = vmul.f32 %v515_v52, %v327_v50 }
 0x348   :  { %v699_v5 = vpop.eup %698  ;;  %v541_v54 = vadd.f32 %v529_v53, %v339_v51 }
 0x349   :  { %v564_v13 = vadd.f32 %v699_v5, %v837_v14 }
 0x34a   :  { %700 = vtanh.f32 %v541_v54 }
 0x34b   :  { %576 = vst.msk [vmem:[%s1181_s9 + $0x50] sm:$0xff] %vm84_vm0, %v564_v13 }
 0x350   :  { %v701_v55 = vpop.eup %700 }
 0x351   :  { %v565_v56 = vadd.f32 %v701_v55, %v844_v15 }
 0x353   :  { %577 = vst.msk [vmem:[%s1181_s9 + $0x58] sm:$0xff] %vm84_vm0, %v565_v56 }

</bundles_post_ra>
